<compile_context>
chip_gen: v5e
topology: v5e:2x2
jax: 0.10.0
libtpu: 0.0.40
codegen_flags: <defaults>
</compile_context>

<pallas_src>
import functools

import jax
import jax.numpy as jnp
from jax.experimental import pallas as pl
from jax.experimental.pallas import tpu as pltpu

EPS = 1e-5          # nn.BatchNorm1d default eps
NEG_SLOPE = 0.01    # nn.LeakyReLU default negative_slope


def _bn_leaky(h, gamma, beta):
    """Single-pass train-mode BatchNorm folded into scale/shift, fused LeakyReLU."""
    mu = jnp.mean(h, axis=0, keepdims=True)
    var = jnp.mean(h * h, axis=0, keepdims=True) - mu * mu
    scale = gamma * jax.lax.rsqrt(var + EPS)
    shift = beta - mu * scale
    out = h * scale + shift
    return jnp.where(out > 0, out, NEG_SLOPE * out)


# ---------------------------------------------------------------------------
# Kernel 1: streamed pixel-row reduction (front half).
#   per tile:  h = x @ W_pre + b_pre  (bf16 MXU, f32 acc)  -> BN moment sums
#              x^T @ Q                (bf16 MXU, f32 acc)  -> superpixel agg
# Outputs are per-core-split partials (leading axis) so the grid's leading
# axis is 'parallel' (one partial per TensorCore on v7x); combined in kernel 2.
# ---------------------------------------------------------------------------
def reduce_kernel(x_ref, q_ref, wpre_ref, bpre_ref,
                  sumh_ref, sumh2_ref, spxt_ref):
    f32 = jnp.float32
    t = pl.program_id(1)

    @pl.when(t == 0)
    def _init():
        sumh_ref[...] = jnp.zeros_like(sumh_ref)
        sumh2_ref[...] = jnp.zeros_like(sumh2_ref)
        spxt_ref[...] = jnp.zeros_like(spxt_ref)

    xb = x_ref[...]                                                  # [tm, C] bf16
    # prelin is only needed per pixel for the BatchNorm moment sums
    h = jnp.dot(xb, wpre_ref[...], preferred_element_type=f32) + bpre_ref[...]
    sumh_ref[0] += jnp.sum(h, axis=0, keepdims=True)
    sumh2_ref[0] += jnp.sum(h * h, axis=0, keepdims=True)
    # TODO(synk): for very large N the E[h^2]-mu^2 variance should move to a
    # per-tile mean-shifted (Welford-style) accumulation to avoid cancellation.

    # Superpixel aggregation at channel width C (not 128): ~3x fewer streamed
    # MACs/pixel.  The f32 round-trip keeps the per-tile transpose on the
    # always-supported 32-bit XLU path (idle slot) while the matmul itself
    # stays bf16 on the MXU.
    xt = xb.astype(f32).T.astype(jnp.bfloat16)                       # [C, tm]
    spxt_ref[0] += jnp.dot(xt, q_ref[...], preferred_element_type=f32)  # [C, S]


# ---------------------------------------------------------------------------
# Kernel 2: tiny superpixel core (runs once, whole arrays resident in VMEM).
#   Combines the per-core partials, applies the prelin BatchNorm as an exact
#   scale/shift reassociation on the aggregated features, runs the 2-layer GCN
#   (single-pass BN + LeakyReLU) and the classifier at superpixel resolution.
# ---------------------------------------------------------------------------
def core_kernel(n_pixels,
                sumh_ref, sumh2_ref, spxt_ref, invcs_ref, a_ref,
                wpre_ref, w1_ref, w2_ref, wsm_ref, vecs_ref,
                lsp_ref):
    # vecs rows: 0:b_pre 1:g0 2:be0 3:b1 4:g1 5:be1 6:b2 7:g2 8:be2
    f32 = jnp.float32

    # combine per-core partial reductions (unrolled, ncs <= 2)
    sumh = sumh_ref[0]
    sumh2 = sumh2_ref[0]
    spxt = spxt_ref[0]
    for c in range(1, sumh_ref.shape[0]):
        sumh = sumh + sumh_ref[c]
        sumh2 = sumh2 + sumh2_ref[c]
        spxt = spxt + spxt_ref[c]

    inv_n = 1.0 / float(n_pixels)
    mu = sumh * inv_n
    var = sumh2 * inv_n - mu * mu
    scale0 = vecs_ref[1:2, :] * jax.lax.rsqrt(var + EPS)
    shift0 = vecs_ref[2:3, :] - mu * scale0

    # qt @ x with the column normalisation folded in             [S, C]
    qtx = spxt.T * invcs_ref[...]
    # qt @ h == (qt @ x) @ W_pre + (qt @ 1) * b_pre, and qt rows sum to 1
    qth = jnp.dot(qtx, wpre_ref[...], preferred_element_type=f32) + vecs_ref[0:1, :]
    # qt @ BN(h) == (qt @ h) * scale + shift   (exact reassociation)
    sp = qth * scale0 + shift0                                   # [S, 128]

    # GCN layer 0: LeakyReLU(BN(A @ (sp @ W1 + b1)))
    z = jnp.dot(sp, w1_ref[...], preferred_element_type=f32) + vecs_ref[3:4, :]
    z = jnp.dot(a_ref[...], z, preferred_element_type=f32)
    z = _bn_leaky(z, vecs_ref[4:5, :], vecs_ref[5:6, :])

    # GCN layer 1
    u = jnp.dot(z, w2_ref[...], preferred_element_type=f32) + vecs_ref[6:7, :]
    u = jnp.dot(a_ref[...], u, preferred_element_type=f32)
    u = _bn_leaky(u, vecs_ref[7:8, :], vecs_ref[8:9, :])

    # classifier at superpixel resolution: Q @ (u @ W) == (Q @ u) @ W
    lsp_ref[...] = jnp.dot(u, wsm_ref[...], preferred_element_type=f32)  # [S, n_class]


# ---------------------------------------------------------------------------
# Kernel 3: pixel back-projection + bias + softmax (row-tiled, 'parallel').
# ---------------------------------------------------------------------------
def project_kernel(q_ref, lsp_ref, bsm_ref, y_ref):
    f32 = jnp.float32
    logits = jnp.dot(q_ref[...], lsp_ref[...], preferred_element_type=f32) + bsm_ref[...]
    m = jnp.max(logits, axis=-1, keepdims=True)
    e = jnp.exp(logits - m)
    denom = jnp.sum(e, axis=-1, keepdims=True)
    y_ref[...] = e * pl.reciprocal(denom, approx=True)


def normalize_adj(A):
    # noramlize(A + I): D^{-1/2} (A + I) D^{-1/2}  (zero-degree guard added)
    A = A + jnp.eye(A.shape[0], dtype=A.dtype)
    D = jnp.maximum(A.sum(axis=1), 1e-12)
    d_inv_sqrt = jax.lax.rsqrt(D)
    return A * d_inv_sqrt[:, None] * d_inv_sqrt[None, :]


def prepare_hgnn_inputs(Q, params):
    """Init-time glue (mirrors nn.Module.__init__): bf16 copies, folded column
    normalisation, packed per-layer [1,128] vectors."""
    qb = Q.astype(jnp.bfloat16)                                  # single N x S stream
    inv_colsum = (1.0 / jnp.sum(qb.astype(jnp.float32), axis=0))[:, None]   # [S, 1]
    wpre_bf = params["w_pre"].astype(jnp.bfloat16)
    vecs = jnp.concatenate([
        params["b_pre"], params["g0"], params["be0"],
        params["b1"], params["g1"], params["be1"],
        params["b2"], params["g2"], params["be2"],
    ], axis=0)                                                   # [9, 128]
    vecs = jnp.pad(vecs, ((0, 16 - vecs.shape[0]), (0, 0)))      # [16, 128]
    return qb, inv_colsum, wpre_bf, vecs


def hgnn_forward(x_img, Q, A_norm, params, *, tm=1024):
    """x_img: [H, W, C] float32; Q: [H*W, S]; A_norm: [S, S].  Returns [N, n_class]."""
    H, W, C = x_img.shape
    N = H * W
    S = Q.shape[1]
    n_class = params["w_sm"].shape[1]

    qb, inv_colsum, wpre_bf, vecs = prepare_hgnn_inputs(Q, params)
    xb = x_img.reshape(N, C).astype(jnp.bfloat16)

    tm = min(tm, N)
    # TODO(synk): remainder tiles are not handled; arbitrary H*W needs a
    # pad+mask of the last tile (masked out of the BN stats and x^T Q sums).
    assert N % tm == 0, (N, tm)
    nt = N // tm
    # Split the streamed reduction into independent partials so v7x's two
    # TensorCores can each own one half ('parallel' leading grid axis).
    ncs = 2 if nt % 2 == 0 else 1
    ntc = nt // ncs

    const2 = lambda c, t: (0, 0)

    # ---- pass 1: streamed pixel-row reduction ------------------------------
    sumh_p, sumh2_p, spxt_p = pl.pallas_call(
        reduce_kernel,
        out_shape=(
            jax.ShapeDtypeStruct((ncs, 1, 128), jnp.float32),
            jax.ShapeDtypeStruct((ncs, 1, 128), jnp.float32),
            jax.ShapeDtypeStruct((ncs, C, S), jnp.float32),
        ),
        grid_spec=pltpu.PrefetchScalarGridSpec(
            num_scalar_prefetch=0,
            grid=(ncs, ntc),
            in_specs=[
                pl.BlockSpec((tm, C), lambda c, t: (c * ntc + t, 0)),   # x   (bf16)
                pl.BlockSpec((tm, S), lambda c, t: (c * ntc + t, 0)),   # Q   (bf16)
                pl.BlockSpec((C, 128), const2),                         # W_pre (bf16)
                pl.BlockSpec((1, 128), const2),                         # b_pre
            ],
            out_specs=(
                pl.BlockSpec((1, 1, 128), lambda c, t: (c, 0, 0)),      # sum(h) partials
                pl.BlockSpec((1, 1, 128), lambda c, t: (c, 0, 0)),      # sum(h*h) partials
                pl.BlockSpec((1, C, S), lambda c, t: (c, 0, 0)),        # x^T Q partials
            ),
        ),
        compiler_params=pltpu.CompilerParams(
            dimension_semantics=("parallel", "arbitrary"),
            vmem_limit_bytes=32 * 1024 * 1024,
        ),
    )(xb, qb, wpre_bf, params["b_pre"])

    # ---- pass 2: tiny superpixel GCN core (whole arrays in VMEM) -----------
    lsp = pl.pallas_call(
        functools.partial(core_kernel, N),
        out_shape=jax.ShapeDtypeStruct((S, n_class), jnp.float32),
    )(sumh_p, sumh2_p, spxt_p, inv_colsum, A_norm,
      wpre_bf, params["w1"], params["w2"], params["w_sm"], vecs)

    # ---- pass 3: pixel back-projection + softmax (parallel row tiles) ------
    y = pl.pallas_call(
        project_kernel,
        out_shape=jax.ShapeDtypeStruct((N, n_class), jnp.float32),
        grid_spec=pltpu.PrefetchScalarGridSpec(
            num_scalar_prefetch=0,
            grid=(nt,),
            in_specs=[
                pl.BlockSpec((tm, S), lambda t: (t, 0)),                # Q (bf16)
                pl.BlockSpec((S, n_class), lambda t: (0, 0)),           # superpixel logits
                pl.BlockSpec((1, n_class), lambda t: (0, 0)),           # b_sm
            ],
            out_specs=pl.BlockSpec((tm, n_class), lambda t: (t, 0)),
        ),
        compiler_params=pltpu.CompilerParams(
            dimension_semantics=("parallel",),
            vmem_limit_bytes=32 * 1024 * 1024,
        ),
    )(qb, lsp, params["b_sm"])
    return y


def hgnn_reference(x_img, Q, A_norm, params):
    """Pure-JAX reference of the original PyTorch forward (for validation)."""
    H, W, C = x_img.shape
    x = x_img.reshape(H * W, C)

    def bn(h, g, b):
        mu = jnp.mean(h, axis=0, keepdims=True)
        var = jnp.mean((h - mu) ** 2, axis=0, keepdims=True)
        return (h - mu) / jnp.sqrt(var + EPS) * g + b

    def leaky(h):
        return jnp.where(h > 0, h, NEG_SLOPE * h)

    with jax.default_matmul_precision("float32"):
        h = bn(x @ params["w_pre"].astype(jnp.float32) + params["b_pre"],
               params["g0"], params["be0"])
        norm_col_Q = Q / jnp.sum(Q, axis=0, keepdims=True)
        sp = norm_col_Q.T @ h
        t = leaky(bn(A_norm @ (sp @ params["w1"] + params["b1"]),
                     params["g1"], params["be1"]))
        u = leaky(bn(A_norm @ (t @ params["w2"] + params["b2"]),
                     params["g2"], params["be2"]))
        g = Q @ u
        logits = g @ params["w_sm"] + params["b_sm"]
        return jax.nn.softmax(logits, axis=-1)


def _linear_init(key, fan_in, w_shape, b_shape):
    # Matches PyTorch nn.Linear default init: U(-1/sqrt(fan_in), 1/sqrt(fan_in)).
    bound = 1.0 / float(fan_in) ** 0.5
    kw, kb = jax.random.split(key)
    w = jax.random.uniform(kw, w_shape, jnp.float32, -bound, bound)
    b = jax.random.uniform(kb, b_shape, jnp.float32, -bound, bound)
    return w, b


if __name__ == "__main__":
    key = jax.random.PRNGKey(0)
    H, W, C = 16, 16, 16        # height, width, channels ("changel")
    S = 64                      # number of superpixels (rows/cols of A, cols of Q)
    n_class = 8                 # class_count
    N = H * W

    keys = jax.random.split(key, 8)
    x = jax.random.normal(keys[0], (H, W, C), jnp.float32)

    # Q: non-negative pixel -> superpixel association matrix [N, S]
    Q = jax.random.uniform(keys[1], (N, S), jnp.float32, 0.0, 1.0)

    # A: symmetric non-negative superpixel adjacency [S, S]; normalized at init.
    A_raw = jax.random.uniform(keys[2], (S, S), jnp.float32, 0.0, 1.0)
    A = 0.5 * (A_raw + A_raw.T)
    A_norm = normalize_adj(A)
    # TODO(synk): sparse-adjacency branch (spareadjacency) is dead code in the
    # reference (ratio < 1 can never exceed 10000), so only the dense path exists.

    w_pre, b_pre = _linear_init(keys[3], C, (C, 128), (1, 128))
    w1, b1 = _linear_init(keys[4], 128, (128, 128), (1, 128))
    w2, b2 = _linear_init(keys[5], 128, (128, 128), (1, 128))
    w_sm, b_sm = _linear_init(keys[6], 128, (128, n_class), (1, n_class))

    params = dict(
        w_pre=w_pre, b_pre=b_pre,
        g0=jnp.ones((1, 128), jnp.float32), be0=jnp.zeros((1, 128), jnp.float32),
        w1=w1, b1=b1,
        g1=jnp.ones((1, 128), jnp.float32), be1=jnp.zeros((1, 128), jnp.float32),
        w2=w2, b2=b2,
        g2=jnp.ones((1, 128), jnp.float32), be2=jnp.zeros((1, 128), jnp.float32),
        w_sm=w_sm, b_sm=b_sm,
    )

    y = hgnn_forward(x, Q, A_norm, params)
    y = jax.block_until_ready(y)

    # Pure-f32 reference of the exact module math.
    y_ref = hgnn_reference(x, Q, A_norm, params)

    # Reference evaluated on the same bf16-quantised streamed operands the
    # kernel consumes (isolates kernel error from input quantisation).
    xq = x.astype(jnp.bfloat16).astype(jnp.float32)
    Qq = Q.astype(jnp.bfloat16).astype(jnp.float32)
    params_q = dict(params,
                    w_pre=params["w_pre"].astype(jnp.bfloat16).astype(jnp.float32))
    y_ref_q = hgnn_reference(xq, Qq, A_norm, params_q)

    assert y.shape == (N, n_class), y.shape
    assert bool(jnp.all(jnp.isfinite(y)))
    # Softmax rows must sum to ~1 (approx EUP reciprocal allows tiny slack).
    assert bool(jnp.allclose(jnp.sum(y, axis=-1), 1.0, atol=5e-3))
    # Tight check of the kernel math (reassociations, single-pass BN, approx
    # reciprocal) against the reference run on identical bf16-rounded inputs.
    assert bool(jnp.allclose(y, y_ref_q, atol=3e-3, rtol=1e-2))
    # Loose sanity bound vs the pure-f32 reference; the gap here is bf16 input
    # quantisation of the streamed operands (x, Q, W_pre), not kernel error.
    assert bool(jnp.allclose(y, y_ref, atol=8e-2))
    print("KERNEL_OK")
</pallas_src>

<mosaic_0001>
module attributes {stable_mosaic.version = 11 : i64} {
  func.func @reduce_kernel(%arg0: i32, %arg1: i32, %arg2: memref<256x16xbf16, #tpu.memory_space<vmem>>, %arg3: memref<256x64xbf16, #tpu.memory_space<vmem>>, %arg4: memref<16x128xbf16, #tpu.memory_space<vmem>>, %arg5: memref<1x128xf32, #tpu.memory_space<vmem>>, %arg6: memref<1x1x128xf32, #tpu.memory_space<vmem>>, %arg7: memref<1x1x128xf32, #tpu.memory_space<vmem>>, %arg8: memref<1x16x64xf32, #tpu.memory_space<vmem>>) attributes {dimension_semantics = [#tpu.dimension_semantics<parallel>, #tpu.dimension_semantics<arbitrary>], iteration_bounds = array<i64: 1, 1>, scalar_prefetch = 0 : i64, scratch_operands = 0 : i64, tpu.core_type = #tpu.core_type<tc>, window_params = [{transform_indices = @transform_0, window_bounds = array<i64: 256, 16>}, {transform_indices = @transform_1, window_bounds = array<i64: 256, 64>}, {pipeline_mode = #tpu.pipeline_mode<synchronous>, transform_indices = @transform_2, window_bounds = array<i64: 16, 128>}, {pipeline_mode = #tpu.pipeline_mode<synchronous>, transform_indices = @transform_3, window_bounds = array<i64: 1, 128>}, {transform_indices = @transform_4, window_bounds = array<i64: 1, 1, 128>}, {transform_indices = @transform_5, window_bounds = array<i64: 1, 1, 128>}, {transform_indices = @transform_6, window_bounds = array<i64: 1, 16, 64>}]} {
    %c0_i32 = arith.constant 0 : i32
    %0 = arith.cmpi eq, %arg1, %c0_i32 : i32
    %1 = arith.extui %0 : i1 to i32
    %c0_i32_0 = arith.constant 0 : i32
    %2 = arith.cmpi ne, %1, %c0_i32_0 : i32
    scf.if %2 {
      %cst_29 = arith.constant 0.000000e+00 : f32
      %37 = vector.broadcast %cst_29 : f32 to vector<1x1x128xf32>
      %c0_30 = arith.constant 0 : index
      %c0_31 = arith.constant 0 : index
      %c0_32 = arith.constant 0 : index
      %38 = vector.load %arg6[%c0_30, %c0_31, %c0_32] : memref<1x1x128xf32, #tpu.memory_space<vmem>>, vector<1x1x128xf32>
      tpu.vector_store %arg6[%c0_30, %c0_31, %c0_32], %37 {strides = array<i32>} : memref<1x1x128xf32, #tpu.memory_space<vmem>>, vector<1x1x128xf32>,
      %cst_33 = arith.constant 0.000000e+00 : f32
      %39 = vector.broadcast %cst_33 : f32 to vector<1x1x128xf32>
      %c0_34 = arith.constant 0 : index
      %c0_35 = arith.constant 0 : index
      %c0_36 = arith.constant 0 : index
      %40 = vector.load %arg7[%c0_34, %c0_35, %c0_36] : memref<1x1x128xf32, #tpu.memory_space<vmem>>, vector<1x1x128xf32>
      tpu.vector_store %arg7[%c0_34, %c0_35, %c0_36], %39 {strides = array<i32>} : memref<1x1x128xf32, #tpu.memory_space<vmem>>, vector<1x1x128xf32>,
      %cst_37 = arith.constant 0.000000e+00 : f32
      %41 = vector.broadcast %cst_37 : f32 to vector<1x16x64xf32>
      %c0_38 = arith.constant 0 : index
      %c0_39 = arith.constant 0 : index
      %c0_40 = arith.constant 0 : index
      %42 = vector.load %arg8[%c0_38, %c0_39, %c0_40] : memref<1x16x64xf32, #tpu.memory_space<vmem>>, vector<1x16x64xf32>
      tpu.vector_store %arg8[%c0_38, %c0_39, %c0_40], %41 {strides = array<i32>} : memref<1x16x64xf32, #tpu.memory_space<vmem>>, vector<1x16x64xf32>,
    } else {
    }
    %c0 = arith.constant 0 : index
    %c0_1 = arith.constant 0 : index
    %3 = vector.load %arg2[%c0, %c0_1] : memref<256x16xbf16, #tpu.memory_space<vmem>>, vector<256x16xbf16>
    %c0_2 = arith.constant 0 : index
    %c0_3 = arith.constant 0 : index
    %4 = vector.load %arg4[%c0_2, %c0_3] : memref<16x128xbf16, #tpu.memory_space<vmem>>, vector<16x128xbf16>
    %cst = arith.constant dense<0.000000e+00> : vector<256x128xf32>
    %5 = tpu.matmul %3, %4, %cst {dimension_numbers = #tpu.dot_dimension_numbers<[1], [0], [0], [1], [0, 0, 1, 1], [], []>} : vector<256x16xbf16>, vector<16x128xbf16>, vector<256x128xf32> -> vector<256x128xf32>
    %c0_4 = arith.constant 0 : index
    %c0_5 = arith.constant 0 : index
    %6 = vector.load %arg5[%c0_4, %c0_5] : memref<1x128xf32, #tpu.memory_space<vmem>>, vector<1x128xf32>
    %7 = vector.broadcast %6 : vector<1x128xf32> to vector<256x128xf32>
    %8 = arith.addf %5, %7 : vector<256x128xf32>
    %c0_6 = arith.constant 0 : index
    %c0_7 = arith.constant 0 : index
    %c0_8 = arith.constant 0 : index
    %9 = vector.load %arg6[%c0_6, %c0_7, %c0_8] : memref<1x1x128xf32, #tpu.memory_space<vmem>>, vector<1x1x128xf32>
    %10 = vector.shape_cast %9 : vector<1x1x128xf32> to vector<1x128xf32>
    %cst_9 = arith.constant dense<0.000000e+00> : vector<128xf32>
    %11 = vector.multi_reduction <add>, %8, %cst_9 [0] : vector<256x128xf32> to vector<128xf32>
    %12 = vector.shape_cast %11 : vector<128xf32> to vector<1x128xf32>
    %13 = arith.addf %10, %12 : vector<1x128xf32>
    %c0_10 = arith.constant 0 : index
    %c0_11 = arith.constant 0 : index
    %c0_12 = arith.constant 0 : index
    %14 = vector.load %arg6[%c0_10, %c0_11, %c0_12] : memref<1x1x128xf32, #tpu.memory_space<vmem>>, vector<1x1x128xf32>
    %15 = vector.shape_cast %14 : vector<1x1x128xf32> to vector<1x128xf32>
    %16 = vector.shape_cast %13 : vector<1x128xf32> to vector<1x1x128xf32>
    tpu.vector_store %arg6[%c0_10, %c0_11, %c0_12], %16 {strides = array<i32>} : memref<1x1x128xf32, #tpu.memory_space<vmem>>, vector<1x1x128xf32>,
    %c0_13 = arith.constant 0 : index
    %c0_14 = arith.constant 0 : index
    %c0_15 = arith.constant 0 : index
    %17 = vector.load %arg7[%c0_13, %c0_14, %c0_15] : memref<1x1x128xf32, #tpu.memory_space<vmem>>, vector<1x1x128xf32>
    %18 = vector.shape_cast %17 : vector<1x1x128xf32> to vector<1x128xf32>
    %19 = arith.mulf %8, %8 : vector<256x128xf32>
    %cst_16 = arith.constant dense<0.000000e+00> : vector<128xf32>
    %20 = vector.multi_reduction <add>, %19, %cst_16 [0] : vector<256x128xf32> to vector<128xf32>
    %21 = vector.shape_cast %20 : vector<128xf32> to vector<1x128xf32>
    %22 = arith.addf %18, %21 : vector<1x128xf32>
    %c0_17 = arith.constant 0 : index
    %c0_18 = arith.constant 0 : index
    %c0_19 = arith.constant 0 : index
    %23 = vector.load %arg7[%c0_17, %c0_18, %c0_19] : memref<1x1x128xf32, #tpu.memory_space<vmem>>, vector<1x1x128xf32>
    %24 = vector.shape_cast %23 : vector<1x1x128xf32> to vector<1x128xf32>
    %25 = vector.shape_cast %22 : vector<1x128xf32> to vector<1x1x128xf32>
    tpu.vector_store %arg7[%c0_17, %c0_18, %c0_19], %25 {strides = array<i32>} : memref<1x1x128xf32, #tpu.memory_space<vmem>>, vector<1x1x128xf32>,
    %26 = arith.extf %3 : vector<256x16xbf16> to vector<256x16xf32>
    %27 = tpu.transpose %26, [1, 0] : vector<256x16xf32> -> vector<16x256xf32>
    %28 = arith.truncf %27 : vector<16x256xf32> to vector<16x256xbf16>
    %c0_20 = arith.constant 0 : index
    %c0_21 = arith.constant 0 : index
    %c0_22 = arith.constant 0 : index
    %29 = vector.load %arg8[%c0_20, %c0_21, %c0_22] : memref<1x16x64xf32, #tpu.memory_space<vmem>>, vector<1x16x64xf32>
    %30 = vector.shape_cast %29 : vector<1x16x64xf32> to vector<16x64xf32>
    %c0_23 = arith.constant 0 : index
    %c0_24 = arith.constant 0 : index
    %31 = vector.load %arg3[%c0_23, %c0_24] : memref<256x64xbf16, #tpu.memory_space<vmem>>, vector<256x64xbf16>
    %cst_25 = arith.constant dense<0.000000e+00> : vector<16x64xf32>
    %32 = tpu.matmul %28, %31, %cst_25 {dimension_numbers = #tpu.dot_dimension_numbers<[1], [0], [0], [1], [0, 0, 1, 1], [], []>} : vector<16x256xbf16>, vector<256x64xbf16>, vector<16x64xf32> -> vector<16x64xf32>
    %33 = arith.addf %30, %32 : vector<16x64xf32>
    %c0_26 = arith.constant 0 : index
    %c0_27 = arith.constant 0 : index
    %c0_28 = arith.constant 0 : index
    %34 = vector.load %arg8[%c0_26, %c0_27, %c0_28] : memref<1x16x64xf32, #tpu.memory_space<vmem>>, vector<1x16x64xf32>
    %35 = vector.shape_cast %34 : vector<1x16x64xf32> to vector<16x64xf32>
    %36 = vector.shape_cast %33 : vector<16x64xf32> to vector<1x16x64xf32>
    tpu.vector_store %arg8[%c0_26, %c0_27, %c0_28], %36 {strides = array<i32>} : memref<1x16x64xf32, #tpu.memory_space<vmem>>, vector<1x16x64xf32>,
    return
  }
  func.func @transform_0(%arg0: i32, %arg1: i32) -> (i32, i32) {
    %c1_i32 = arith.constant 1 : i32
    %0 = arith.muli %arg0, %c1_i32 : i32
    %1 = arith.addi %0, %arg1 : i32
    %c0_i32 = arith.constant 0 : i32
    %c0_i32_0 = arith.constant 0 : i32
    return %1, %c0_i32 : i32, i32
  }
  func.func @transform_1(%arg0: i32, %arg1: i32) -> (i32, i32) {
    %c1_i32 = arith.constant 1 : i32
    %0 = arith.muli %arg0, %c1_i32 : i32
    %1 = arith.addi %0, %arg1 : i32
    %c0_i32 = arith.constant 0 : i32
    %c0_i32_0 = arith.constant 0 : i32
    return %1, %c0_i32 : i32, i32
  }
  func.func @transform_2(%arg0: i32, %arg1: i32) -> (i32, i32) {
    %c0_i32 = arith.constant 0 : i32
    %c0_i32_0 = arith.constant 0 : i32
    %c0_i32_1 = arith.constant 0 : i32
    return %c0_i32, %c0_i32_0 : i32, i32
  }
  func.func @transform_3(%arg0: i32, %arg1: i32) -> (i32, i32) {
    %c0_i32 = arith.constant 0 : i32
    %c0_i32_0 = arith.constant 0 : i32
    %c0_i32_1 = arith.constant 0 : i32
    return %c0_i32, %c0_i32_0 : i32, i32
  }
  func.func @transform_4(%arg0: i32, %arg1: i32) -> (i32, i32, i32) {
    %c0_i32 = arith.constant 0 : i32
    %c0_i32_0 = arith.constant 0 : i32
    %c0_i32_1 = arith.constant 0 : i32
    return %arg0, %c0_i32, %c0_i32_0 : i32, i32, i32
  }
  func.func @transform_5(%arg0: i32, %arg1: i32) -> (i32, i32, i32) {
    %c0_i32 = arith.constant 0 : i32
    %c0_i32_0 = arith.constant 0 : i32
    %c0_i32_1 = arith.constant 0 : i32
    return %arg0, %c0_i32, %c0_i32_0 : i32, i32, i32
  }
  func.func @transform_6(%arg0: i32, %arg1: i32) -> (i32, i32, i32) {
    %c0_i32 = arith.constant 0 : i32
    %c0_i32_0 = arith.constant 0 : i32
    %c0_i32_1 = arith.constant 0 : i32
    return %arg0, %c0_i32, %c0_i32_0 : i32, i32, i32
  }
}

</mosaic_0001>

<bundles_post_ra>
// kernel: tpu_custom_call.1
= control target key start
LH: loop header
LB: loop body
LE: loop exit
PB: predicated region body
PF: predicated region fallthrough
CT: control target
= control target key end

     0   :  { %12 = vsyncpa [#allocation3], 0  ;;  %vm200_vm0 = vcmask 130048   ;;  %s1371_s0 = inlined_call_operand.vmem [shape: bf16[256,16], index: 0, kind: input, shape index: {}]   ;;  %s1372_s1 = inlined_call_operand.vmem [shape: bf16[256,64], index: 1, kind: input, shape index: {}]   ;;  %s1373_s2 = inlined_call_operand.vmem [shape: bf16[16,128], index: 2, kind: input, shape index: {}]   ;;  %s1374_s3 = inlined_call_operand.vmem [shape: f32[1,128], index: 3, kind: input, shape index: {}]   ;;  %s1375_s4 = inlined_call_operand.hbm [shape: f32[1,1,128], index: 4, kind: output, shape index: {0}]   ;;  %s1376_s5 = inlined_call_operand.hbm [shape: f32[1,1,128], index: 5, kind: output, shape index: {1}]   ;;  %s1377_s6 = inlined_call_operand.hbm [shape: f32[1,16,64], index: 6, kind: output, shape index: {2}]  }
   0x1   :  { %v936_v0 = vld [vmem:[%s1373_s2] sm:$0xff] }
   0x2   :  { %v76_v1 = vld [vmem:[%s1371_s0] sm:$0xff]   ;;  %256 = vmatpush.bf16.msra.mxu0 %v936_v0  ;;  %953 = vmatpush.bf16.msra.mxu1 %v936_v0 }
   0x3   :  { %v92_v2 = vld [vmem:[%s1371_s0 + $0x40] sm:$0xff]   ;;  %v450_v3 = vunpack.c.l.bf16 %v76_v1  ;;  %954 = vmatpush.bf16.msra.mxu3 %v936_v0 }
   0x4   :  { %v466_v4 = vunpack.c.l.bf16 %v92_v2  ;;  %v920_v5 = vld [vmem:[%s1371_s0] sm:$0xff] }
   0x6   :  { %v961_v6 = vpack.i.bf16 %v450_v3, %v466_v4 }
   0x7   :  { %13 = vsyncpa [#allocation5], 0  ;;  %840 = vmatmul.msk.bf16.vlgmr.msra.gmra.mxu0 %vm200_vm0, %v920_v5  ;;  %v451_v7 = vunpack.c.h.bf16 %v76_v1  ;;  %v467_v8 = vunpack.c.h.bf16 %v92_v2  ;;  %v926_v9 = vld [vmem:[%s1371_s0 + $0x30] sm:$0xff]  ;;  %v78_v11 = vld [vmem:[%s1371_s0 + $0x8] sm:$0xff]   ;;  %s718_s22 = sshll.u32 %s1375_s4, 4  ;;  %s1082_s23 = smov [#allocation4]   ;;  %s719_s22 = int_to_ptr.hbm [resolvable:$true] %s718_s22 }
   0x8   :  { %962 = vxpose.xlu0.b32.start [1/16] (narrow) %v961_v6, 16  ;;  %846 = vmatmul.msk.bf16.vlgmr.msra.gmra.mxu1 %vm200_vm0, %v926_v9  ;;  %v94_v12 = vld [vmem:[%s1371_s0 + $0x48] sm:$0xff]   ;;  %v452_v13 = vunpack.c.l.bf16 %v78_v11  ;;  %v453_v17 = vunpack.c.h.bf16 %v78_v11  ;;  %v931_v19 = vld [vmem:[%s1371_s0 + $0x58] sm:$0xff]  ;;  %v80_v22 = vld [vmem:[%s1371_s0 + $0x10] sm:$0xff]   ;;  %s727_s24 = sshll.u32 %s1082_s23, 4  ;;  %s729_s26 = sshll.u32 %s1376_s5, 4  ;;  %s728_s24 = int_to_ptr.vmem [resolvable:$true] %s727_s24  ;;  %s730_s26 = int_to_ptr.hbm [resolvable:$true] %s729_s26 }
   0x9   :  { %v963_v10 = vpack.i.bf16 %v451_v7, %v467_v8  ;;  %v468_v14 = vunpack.c.l.bf16 %v94_v12  ;;  %v921_v16 = vld [vmem:[%s1371_s0 + $0x8] sm:$0xff]  ;;  %v469_v18 = vunpack.c.h.bf16 %v94_v12  ;;  %v927_v20 = vld [vmem:[%s1371_s0 + $0x38] sm:$0xff]  ;;  %851 = vmatmul.msk.bf16.vlgmr.msra.gmra.mxu3 %vm200_vm0, %v931_v19  ;;  %v96_v23 = vld [vmem:[%s1371_s0 + $0x50] sm:$0xff]   ;;  %v454_v24 = vunpack.c.l.bf16 %v80_v22  ;;  %s1083_s4 = smov [#allocation6]   ;;  %s739_s2 = sshll.u32 %s1377_s6, 4  ;;  %s740_s2 = int_to_ptr.hbm [resolvable:$true] %s739_s2 }
   0xa   :  { %v470_v25 = vunpack.c.l.bf16 %v96_v23  ;;  %v922_v27 = vld [vmem:[%s1371_s0 + $0x10] sm:$0xff]  ;;  %v455_v28 = vunpack.c.h.bf16 %v80_v22  ;;  %v471_v29 = vunpack.c.h.bf16 %v96_v23  ;;  %v932_v30 = vld [vmem:[%s1371_s0 + $0x60] sm:$0xff]  ;;  %v82_v33 = vld [vmem:[%s1371_s0 + $0x18] sm:$0xff]   ;;  %vm73_vm1 = vcmask 523264   ;;  %s737_s5 = sshll.u32 %s1083_s4, 4  ;;  %s1084_s29 = smov 128   ;;  %s738_s5 = int_to_ptr.vmem [resolvable:$true] %s737_s5 }
   0xb   :  { %v965_v15 = vpack.i.bf16 %v452_v13, %v468_v14  ;;  %v967_v21 = vpack.i.bf16 %v453_v17, %v469_v18  ;;  %v928_v31 = vld [vmem:[%s1371_s0 + $0x40] sm:$0xff]  ;;  %v98_v34 = vld [vmem:[%s1371_s0 + $0x58] sm:$0xff]   ;;  %v456_v35 = vunpack.c.l.bf16 %v82_v33  ;;  %v457_v39 = vunpack.c.h.bf16 %v82_v33  ;;  %v933_v41 = vld [vmem:[%s1371_s0 + $0x68] sm:$0xff]  ;;  %s1085_s30 = smov 8  }
   0xc   :  { %v969_v26 = vpack.i.bf16 %v454_v24, %v470_v25  ;;  %v971_v32 = vpack.i.bf16 %v455_v28, %v471_v29  ;;  %v472_v36 = vunpack.c.l.bf16 %v98_v34  ;;  %v923_v38 = vld [vmem:[%s1371_s0 + $0x18] sm:$0xff]  ;;  %v473_v40 = vunpack.c.h.bf16 %v98_v34  ;;  %v929_v42 = vld [vmem:[%s1371_s0 + $0x48] sm:$0xff]  ;;  %v84_v44 = vld [vmem:[%s1371_s0 + $0x20] sm:$0xff]  }
   0xd   :  { %v100_v45 = vld [vmem:[%s1371_s0 + $0x60] sm:$0xff]   ;;  %v458_v46 = vunpack.c.l.bf16 %v84_v44  ;;  %v459_v50 = vunpack.c.h.bf16 %v84_v44  ;;  %v934_v52 = vld [vmem:[%s1371_s0 + $0x70] sm:$0xff]  ;;  %v944_v54 = vld [vmem:[%s1372_s1 + $0x38] sm:$0xff] }
   0xe   :  { %v973_v37 = vpack.i.bf16 %v456_v35, %v472_v36  ;;  %v975_v43 = vpack.i.bf16 %v457_v39, %v473_v40  ;;  %v474_v47 = vunpack.c.l.bf16 %v100_v45  ;;  %v924_v49 = vld [vmem:[%s1371_s0 + $0x20] sm:$0xff]  ;;  %v475_v51 = vunpack.c.h.bf16 %v100_v45  ;;  %v930_v53 = vld [vmem:[%s1371_s0 + $0x50] sm:$0xff]  ;;  %678 = vmatpush.bf16.msrb.mxu1 %v944_v54  ;;  %v86_v56 = vld [vmem:[%s1371_s0 + $0x28] sm:$0xff]  }
   0xf   :  { %v102_v57 = vld [vmem:[%s1371_s0 + $0x68] sm:$0xff]   ;;  %v460_v58 = vunpack.c.l.bf16 %v86_v56  ;;  %v461_v62 = vunpack.c.h.bf16 %v86_v56  ;;  %v943_v0 = vld [vmem:[%s1372_s1 + $0x30] sm:$0xff]  ;;  %v935_v1 = vld [vmem:[%s1371_s0 + $0x78] sm:$0xff] }
  0x10   :  { %964 = vxpose.xlu0.b32.cont [2/16] (narrow) %v963_v10, 16  ;;  %v977_v48 = vpack.i.bf16 %v458_v46, %v474_v47  ;;  %v979_v55 = vpack.i.bf16 %v459_v50, %v475_v51  ;;  %v476_v59 = vunpack.c.l.bf16 %v102_v57  ;;  %v925_v61 = vld [vmem:[%s1371_s0 + $0x28] sm:$0xff]  ;;  %v477_v63 = vunpack.c.h.bf16 %v102_v57  ;;  %v88_v3 = vld [vmem:[%s1371_s0 + $0x30] sm:$0xff]   ;;  %v941_v11 = vld [vmem:[%s1372_s1 + $0x20] sm:$0xff] }
  0x11   :  { %v104_v4 = vld [vmem:[%s1371_s0 + $0x70] sm:$0xff]   ;;  %v462_v5 = vunpack.c.l.bf16 %v88_v3  ;;  %v942_v7 = vld [vmem:[%s1372_s1 + $0x28] sm:$0xff]  ;;  %v463_v9 = vunpack.c.h.bf16 %v88_v3  ;;  %v90_v13 = vld [vmem:[%s1371_s0 + $0x38] sm:$0xff]  }
  0x12   :  { %v981_v60 = vpack.i.bf16 %v460_v58, %v476_v59  ;;  %679 = vmatpush.bf16.msrb.mxu1 %v943_v0  ;;  %v983_v2 = vpack.i.bf16 %v461_v62, %v477_v63  ;;  %v478_v6 = vunpack.c.l.bf16 %v104_v4  ;;  %v479_v10 = vunpack.c.h.bf16 %v104_v4  ;;  %v106_v14 = vld [vmem:[%s1371_s0 + $0x78] sm:$0xff]   ;;  %v951_v23 = vld [vmem:[%s1372_s1 + $0x70] sm:$0xff]  ;;  %v950_v24 = vld [vmem:[%s1372_s1 + $0x68] sm:$0xff] }
  0x13   :  { %v465_v18 = vunpack.c.h.bf16 %v90_v13  ;;  %v481_v19 = vunpack.c.h.bf16 %v106_v14  ;;  %v939_v25 = vld [vmem:[%s1372_s1 + $0x10] sm:$0xff]  ;;  %v948_v28 = vld [vmem:[%s1372_s1 + $0x58] sm:$0xff]  ;;  %v938_v29 = vld [vmem:[%s1372_s1 + $0x8] sm:$0xff] }
  0x14   :  { %v985_v8 = vpack.i.bf16 %v462_v5, %v478_v6  ;;  %v987_v12 = vpack.i.bf16 %v463_v9, %v479_v10  ;;  %v946_v33 = vld [vmem:[%s1372_s1 + $0x48] sm:$0xff]  ;;  %v937_v34 = vld [vmem:[%s1372_s1] sm:$0xff] }
  0x15   :  { %v991_v22 = vpack.i.bf16 %v465_v18, %v481_v19  ;;  %v945_v35 = vld [vmem:[%s1372_s1 + $0x40] sm:$0xff] }
  0x16   :  { %680 = vmatpush.bf16.msrb.mxu1 %v942_v7 }
  0x17   :  { %841 = vmatmul.msk.bf16.gmra.mxu0 %vm200_vm0, %v921_v16  ;;  %v480_v16 = vunpack.c.l.bf16 %v106_v14 }
  0x18   :  { %966 = vxpose.xlu0.b32.cont [3/16] (narrow) %v965_v15, 16  ;;  %847 = vmatmul.msk.bf16.gmra.mxu1 %vm200_vm0, %v927_v20  ;;  %v464_v15 = vunpack.c.l.bf16 %v90_v13  ;;  %v952_v20 = vld [vmem:[%s1372_s1 + $0x78] sm:$0xff] }
  0x19   :  { %852 = vmatmul.msk.bf16.gmra.mxu3 %vm200_vm0, %v932_v30  ;;  %692 = vmatpush.bf16.msra.mxu2 %v952_v20  ;;  %v947_v30 = vld [vmem:[%s1372_s1 + $0x50] sm:$0xff] }
  0x1a   :  { %681 = vmatpush.bf16.msrb.mxu1 %v941_v11  ;;  %v989_v17 = vpack.i.bf16 %v464_v15, %v480_v16 }
  0x1d   :  { %693 = vmatpush.bf16.msra.mxu2 %v951_v23 }
  0x20   :  { %968 = vxpose.xlu0.b32.cont [4/16] (narrow) %v967_v21, 16  ;;  %v940_v21 = vld [vmem:[%s1372_s1 + $0x18] sm:$0xff] }
  0x21   :  { %682 = vmatpush.bf16.msrb.mxu1 %v940_v21  ;;  %694 = vmatpush.bf16.msra.mxu2 %v950_v24 }
  0x25   :  { %683 = vmatpush.bf16.msrb.mxu1 %v939_v25 }
  0x27   :  { %842 = vmatmul.msk.bf16.gmra.mxu0 %vm200_vm0, %v922_v27 }
  0x28   :  { %970 = vxpose.xlu0.b32.cont [5/16] (narrow) %v969_v26, 16  ;;  %848 = vmatmul.msk.bf16.gmra.mxu1 %vm200_vm0, %v928_v31  ;;  %v949_v26 = vld [vmem:[%s1372_s1 + $0x60] sm:$0xff] }
  0x29   :  { %853 = vmatmul.msk.bf16.gmra.mxu3 %vm200_vm0, %v933_v41  ;;  %695 = vmatpush.bf16.msra.mxu2 %v949_v26 }
  0x2a   :  { %684 = vmatpush.bf16.msrb.mxu1 %v938_v29 }
  0x2d   :  { %696 = vmatpush.bf16.msra.mxu2 %v948_v28 }
  0x2e   :  { %685 = vmatpush.bf16.msrb.mxu1 %v937_v34 }
  0x30   :  { %972 = vxpose.xlu0.b32.cont [6/16] (narrow) %v971_v32, 16 }
  0x31   :  { %697 = vmatpush.bf16.msra.mxu2 %v947_v30 }
  0x35   :  { %698 = vmatpush.bf16.msra.mxu2 %v946_v33 }
  0x37   :  { %843 = vmatmul.msk.bf16.gmra.mxu0 %vm200_vm0, %v923_v38 }
  0x38   :  { %974 = vxpose.xlu0.b32.cont [7/16] (narrow) %v973_v37, 16  ;;  %849 = vmatmul.msk.bf16.gmra.mxu1 %vm200_vm0, %v929_v42 }
  0x39   :  { %854 = vmatmul.msk.bf16.gmra.mxu3 %vm200_vm0, %v934_v52  ;;  %699 = vmatpush.bf16.msra.mxu2 %v945_v35  ;;  %v1299_v52 = vld [vmem:[%s1374_s3] ss:$0 sm:$0xff]  ;;  %s1081_s3 = smov [#allocation2]  }
  0x3a   :  { %s716_s19 = sshll.u32 %s1081_s3, 4  ;;  %s717_s19 = int_to_ptr.vmem [resolvable:$true] %s716_s19 }
  0x40   :  { %976 = vxpose.xlu0.b32.cont [8/16] (narrow) %v975_v43, 16 }
  0x47   :  { %844 = vmatmul.msk.bf16.gmra.mxu0 %vm200_vm0, %v924_v49 }
  0x48   :  { %978 = vxpose.xlu0.b32.cont [9/16] (narrow) %v977_v48, 16  ;;  %850 = vmatmul.msk.bf16.gmra.mxu1 %vm200_vm0, %v930_v53 }
  0x49   :  { %855 = vmatmul.msk.bf16.gmra.mxu3 %vm200_vm0, %v935_v1 }
  0x50   :  { %980 = vxpose.xlu0.b32.cont [10/16] (narrow) %v979_v55, 16 }
  0x57   :  { %845 = vmatmul.msk.bf16.gmra.mxu0 %vm200_vm0, %v925_v61 }
  0x58   :  { %982 = vxpose.xlu0.b32.cont [11/16] (narrow) %v981_v60, 16 }
  0x60   :  { %984 = vxpose.xlu0.b32.cont [12/16] (narrow) %v983_v2, 16 }
  0x68   :  { %986 = vxpose.xlu0.b32.cont [13/16] (narrow) %v985_v8, 16 }
  0x70   :  { %988 = vxpose.xlu0.b32.cont [14/16] (narrow) %v987_v12, 16 }
  0x78   :  { %990 = vxpose.xlu0.b32.cont [15/16] (narrow) %v989_v17, 16 }
  0x80   :  { %992 = vxpose.xlu0.b32.end [16/16] (narrow) %v991_v22, 16 }
  0x84   :  { %v258_v27 = vpop.f32.mrf.mxu0 }
  0x85   :  { %v1275_v32 = vpop.f32.mrf.mxu1  ;;  %v259_v57 = vadd.f32 %v1299_v52, %v258_v27 }
  0x87   :  { %v379_v60 = vmul.f32 %v259_v57, %v259_v57 }
  0x8c   :  { %v260_v31 = vpop.f32.mrf.mxu0  ;;  %v1290_v41 = vpop.f32.mrf.mxu3 }
  0x8d   :  { %v1286_v37 = vpop.f32.mrf.mxu1  ;;  %v261_v58 = vadd.f32 %v1299_v52, %v260_v31 }
  0x8f   :  { %v380_v61 = vmul.f32 %v261_v58, %v261_v58  ;;  %v339_v63 = vadd.f32 %v261_v58, %v259_v57 }
  0x91   :  { %v411_v0 = vadd.f32 %v380_v61, %v379_v60 }
  0x94   :  { %v263_v36 = vpop.f32.mrf.mxu0  ;;  %v1294_v45 = vpop.f32.mrf.mxu3 }
  0x95   :  { %v1288_v39 = vpop.f32.mrf.mxu1  ;;  %v264_v62 = vadd.f32 %v1299_v52, %v263_v36 }
  0x96   :  { %v294_v57 = vadd.f32 %v1299_v52, %v1288_v39 }
  0x97   :  { %v381_v1 = vmul.f32 %v264_v62, %v264_v62  ;;  %v340_v5 = vadd.f32 %v339_v63, %v264_v62 }
  0x99   :  { %v412_v7 = vadd.f32 %v411_v0, %v381_v1 }
  0x9c   :  { %v265_v38 = vpop.f32.mrf.mxu0  ;;  %v1303_v56 = vpop.f32.mrf.mxu3 }
  0x9d   :  { %v1292_v44 = vpop.f32.mrf.mxu1  ;;  %v266_v2 = vadd.f32 %v1299_v52, %v265_v38 }
  0x9e   :  { %v296_v0 = vadd.f32 %v1299_v52, %v1292_v44 }
  0x9f   :  { %v382_v8 = vmul.f32 %v266_v2, %v266_v2  ;;  %v341_v10 = vadd.f32 %v340_v5, %v266_v2  ;;  %v393_v5 = vmul.f32 %v294_v57, %v294_v57 }
  0xa1   :  { %v413_v11 = vadd.f32 %v412_v7, %v382_v8  ;;  %v394_v8 = vmul.f32 %v296_v0, %v296_v0 }
  0xa4   :  { %v268_v40 = vpop.f32.mrf.mxu0  ;;  %v1309_v4 = vpop.f32.mrf.mxu3 }
  0xa5   :  { %v1301_v55 = vpop.f32.mrf.mxu1  ;;  %v269_v9 = vadd.f32 %v1299_v52, %v268_v40 }
  0xa7   :  { %v383_v12 = vmul.f32 %v269_v9, %v269_v9  ;;  %v342_v14 = vadd.f32 %v341_v10, %v269_v9 }
  0xa9   :  { %v414_v18 = vadd.f32 %v413_v11, %v383_v12 }
  0xac   :  { %v993_v42 = vpop.trf.xlu0  ;;  %v270_v43 = vpop.f32.mrf.mxu0 }
  0xad   :  { %v997_v46 = vunpack.i.h.bf16 %v993_v42  ;;  %v994_v48 = vunpack.i.l.bf16 %v993_v42  ;;  %v300_v3 = vpop.f32.mrf.mxu1  ;;  %v271_v13 = vadd.f32 %v1299_v52, %v270_v43  ;;  %v1313_v17 = vpop.f32.mrf.mxu3 }
  0xae   :  { %v301_v39 = vadd.f32 %v1299_v52, %v300_v3 }
  0xaf   :  { %v384_v19 = vmul.f32 %v271_v13, %v271_v13  ;;  %v343_v21 = vadd.f32 %v342_v14, %v271_v13 }
  0xb0   :  { %v396_v44 = vmul.f32 %v301_v39, %v301_v39 }
  0xb1   :  { %v415_v22 = vadd.f32 %v414_v18, %v384_v19 }
  0xb4   :  { %v998_v47 = vpop.trf.xlu0  ;;  %v273_v50 = vpop.f32.mrf.mxu0 }
  0xb5   :  { %v1002_v49 = vunpack.i.h.bf16 %v998_v47  ;;  %v999_v51 = vunpack.i.l.bf16 %v998_v47  ;;  %v303_v15 = vpop.f32.mrf.mxu1  ;;  %v274_v20 = vadd.f32 %v1299_v52, %v273_v50  ;;  %v1319_v33 = vpop.f32.mrf.mxu3 }
  0xb6   :  { %v304_v12 = vadd.f32 %v1299_v52, %v303_v15  ;;  %v1080_v15 = vmov 0.0  }
  0xb7   :  { %v546_v53 = vpack.c.bf16 %v1002_v49, %v997_v46  ;;  %v547_v54 = vpack.c.bf16 %v999_v51, %v994_v48  ;;  %v385_v23 = vmul.f32 %v274_v20, %v274_v20  ;;  %v344_v25 = vadd.f32 %v343_v21, %v274_v20  ;;  %71 = vst [vmem:[#allocation2] sm:$0x1] %v1080_v15 }
  0xb8   :  { %v289_v49 = vadd.f32 %v1299_v52, %v1275_v32  ;;  %72 = vst [vmem:[#allocation4] sm:$0x1] %v1080_v15 }
  0xb9   :  { %686 = vmatmul.bf16.vlgmr.msrb.gmra.mxu1 %v546_v53  ;;  %700 = vmatmul.bf16.vlgmr.msra.gmra.mxu2 %v547_v54  ;;  %v416_v28 = vadd.f32 %v415_v22, %v385_v23  ;;  %v291_v54 = vadd.f32 %v1299_v52, %v1286_v37  ;;  %74 = vst.msk [vmem:[#allocation6] sm:$0xff] %vm73_vm1, %v1080_v15 }
  0xba   :  { %v391_v63 = vmul.f32 %v289_v49, %v289_v49  ;;  %75 = vst.msk [vmem:[#allocation6 + $0x8] sm:$0xff] %vm73_vm1, %v1080_v15 }
  0xbb   :  { %v392_v2 = vmul.f32 %v291_v54, %v291_v54 }
  0xbc   :  { %v275_v59 = vpop.f32.mrf.mxu0 }
  0xbd   :  { %v276_v24 = vadd.f32 %v1299_v52, %v275_v59  ;;  %v305_v31 = vpop.f32.mrf.mxu1  ;;  %v328_v62 = vpop.f32.mrf.mxu3 }
  0xbf   :  { %v386_v29 = vmul.f32 %v276_v24, %v276_v24  ;;  %v345_v34 = vadd.f32 %v344_v25, %v276_v24 }
  0xc1   :  { %v417_v38 = vadd.f32 %v416_v28, %v386_v29 }
  0xc4   :  { %v278_v6 = vpop.f32.mrf.mxu0 }
  0xc5   :  { %v279_v26 = vadd.f32 %v1299_v52, %v278_v6  ;;  %v308_v61 = vpop.f32.mrf.mxu1  ;;  %v299_v6 = vadd.f32 %v1299_v52, %v1301_v55  ;;  %v330_v21 = vpop.f32.mrf.mxu3  ;;  %v397_v55 = vmul.f32 %v304_v12, %v304_v12 }
  0xc6   :  { %v309_v24 = vadd.f32 %v1299_v52, %v308_v61  ;;  %v329_v61 = vadd.f32 %v1299_v52, %v328_v62 }
  0xc7   :  { %v387_v35 = vmul.f32 %v279_v26, %v279_v26  ;;  %v346_v40 = vadd.f32 %v345_v34, %v279_v26  ;;  %v395_v11 = vmul.f32 %v299_v6, %v299_v6 }
  0xc9   :  { %v418_v43 = vadd.f32 %v417_v38, %v387_v35  ;;  %v316_v38 = vadd.f32 %v1299_v52, %v1294_v45 }
  0xcc   :  { %v280_v16 = vpop.f32.mrf.mxu0 }
  0xcd   :  { %v281_v30 = vadd.f32 %v1299_v52, %v280_v16  ;;  %v306_v16 = vadd.f32 %v1299_v52, %v305_v31  ;;  %v310_v20 = vpop.f32.mrf.mxu1  ;;  %v314_v31 = vadd.f32 %v1299_v52, %v1290_v41 }
  0xcf   :  { %v388_v42 = vmul.f32 %v281_v30, %v281_v30  ;;  %v347_v46 = vadd.f32 %v346_v40, %v281_v30  ;;  %v398_v25 = vmul.f32 %v306_v16, %v306_v16  ;;  %v399_v30 = vmul.f32 %v309_v24, %v309_v24 }
  0xd0   :  { %v319_v40 = vadd.f32 %v1299_v52, %v1303_v56  ;;  %v326_v56 = vadd.f32 %v1299_v52, %v1319_v33 }
  0xd1   :  { %v419_v50 = vadd.f32 %v418_v43, %v388_v42 }
  0xd2   :  { %v403_v41 = vmul.f32 %v319_v40, %v319_v40 }
  0xd4   :  { %v283_v27 = vpop.f32.mrf.mxu0 }
  0xd5   :  { %v284_v36 = vadd.f32 %v1299_v52, %v283_v27  ;;  %v311_v27 = vadd.f32 %v1299_v52, %v310_v20 }
  0xd7   :  { %v389_v47 = vmul.f32 %v284_v36, %v284_v36  ;;  %v348_v51 = vadd.f32 %v347_v46, %v284_v36  ;;  %v400_v36 = vmul.f32 %v311_v27, %v311_v27  ;;  %v333_v46 = vpop.f32.mrf.mxu3 }
  0xd9   :  { %v420_v58 = vadd.f32 %v419_v50, %v389_v47  ;;  %v401_v47 = vmul.f32 %v314_v31, %v314_v31 }
  0xdc   :  { %v285_v48 = vpop.f32.mrf.mxu0 }
  0xdd   :  { %v286_v53 = vadd.f32 %v1299_v52, %v285_v48  ;;  %v321_v48 = vadd.f32 %v1299_v52, %v1309_v4 }
  0xdf   :  { %v349_v59 = vadd.f32 %v348_v51, %v286_v53  ;;  %v390_v60 = vmul.f32 %v286_v53, %v286_v53  ;;  %v402_v51 = vmul.f32 %v316_v38, %v316_v38  ;;  %v324_v53 = vadd.f32 %v1299_v52, %v1313_v17 }
  0xe0   :  { %v404_v45 = vmul.f32 %v321_v48, %v321_v48  ;;  %v407_v17 = vmul.f32 %v329_v61, %v329_v61 }
  0xe1   :  { %v350_v32 = vadd.f32 %v349_v59, %v289_v49  ;;  %v421_v1 = vadd.f32 %v420_v58, %v390_v60  ;;  %v405_v60 = vmul.f32 %v324_v53, %v324_v53 }
  0xe3   :  { %v351_v37 = vadd.f32 %v350_v32, %v291_v54  ;;  %v422_v7 = vadd.f32 %v421_v1, %v391_v63  ;;  %v331_v32 = vadd.f32 %v1299_v52, %v330_v21 }
  0xe5   :  { %v352_v9 = vadd.f32 %v351_v37, %v294_v57  ;;  %v423_v10 = vadd.f32 %v422_v7, %v392_v2  ;;  %v334_v7 = vadd.f32 %v1299_v52, %v333_v46  ;;  %v408_v33 = vmul.f32 %v331_v32, %v331_v32 }
  0xe7   :  { %v424_v13 = vadd.f32 %v423_v10, %v393_v5  ;;  %v353_v14 = vadd.f32 %v352_v9, %v296_v0  ;;  %v406_v0 = vmul.f32 %v326_v56, %v326_v56  ;;  %v335_v5 = vpop.f32.mrf.mxu3 }
  0xe8   :  { %v336_v9 = vadd.f32 %v1299_v52, %v335_v5 }
  0xe9   :  { %v354_v18 = vadd.f32 %v353_v14, %v299_v6  ;;  %v425_v19 = vadd.f32 %v424_v13, %v394_v8 }
  0xea   :  { %v410_v14 = vmul.f32 %v336_v9, %v336_v9 }
  0xeb   :  { %v355_v22 = vadd.f32 %v354_v18, %v301_v39  ;;  %v426_v23 = vadd.f32 %v425_v19, %v395_v11  ;;  %v409_v11 = vmul.f32 %v334_v7, %v334_v7 }
  0xed   :  { %v356_v3 = vadd.f32 %v355_v22, %v304_v12  ;;  %v427_v26 = vadd.f32 %v426_v23, %v396_v44 }
  0xef   :  { %v357_v28 = vadd.f32 %v356_v3, %v306_v16  ;;  %v428_v29 = vadd.f32 %v427_v26, %v397_v55  ;;  %v338_v26 = vld [vmem:[#allocation2] sm:$0x1] }
  0xf1   :  { %v429_v34 = vadd.f32 %v428_v29, %v398_v25  ;;  %v358_v35 = vadd.f32 %v357_v28, %v309_v24  ;;  %v378_v28 = vld [vmem:[#allocation4] sm:$0x1] }
  0xf3   :  { %v430_v42 = vadd.f32 %v429_v34, %v399_v30  ;;  %v359_v43 = vadd.f32 %v358_v35, %v311_v27  ;;  %v548_v35 = vld [vmem:[#allocation6] sm:$0xff] }
  0xf5   :  { %v360_v49 = vadd.f32 %v359_v43, %v314_v31  ;;  %v431_v50 = vadd.f32 %v430_v42, %v400_v36  ;;  %v549_v42 = vld [vmem:[#allocation6 + $0x8] sm:$0xff] }
  0xf7   :  { %v361_v54 = vadd.f32 %v360_v49, %v316_v38  ;;  %v432_v57 = vadd.f32 %v431_v50, %v401_v47 }
  0xf9   :  { %v362_v58 = vadd.f32 %v361_v54, %v319_v40  ;;  %v433_v59 = vadd.f32 %v432_v57, %v402_v51 }
  0xfb   :  { %v434_v63 = vadd.f32 %v433_v59, %v403_v41  ;;  %v363_v4 = vadd.f32 %v362_v58, %v321_v48 }
  0xfd   :  { %v364_v1 = vadd.f32 %v363_v4, %v324_v53  ;;  %v435_v2 = vadd.f32 %v434_v63, %v404_v45 }
  0xff   :  { %v365_v6 = vadd.f32 %v364_v1, %v326_v56  ;;  %v436_v37 = vadd.f32 %v435_v2, %v405_v60 }
 0x101   :  { %v366_v8 = vadd.f32 %v365_v6, %v329_v61  ;;  %v437_v39 = vadd.f32 %v436_v37, %v406_v0 }
 0x103   :  { %v367_v10 = vadd.f32 %v366_v8, %v331_v32  ;;  %v438_v62 = vadd.f32 %v437_v39, %v407_v17 }
 0x105   :  { %v439_v12 = vadd.f32 %v438_v62, %v408_v33  ;;  %v368_v13 = vadd.f32 %v367_v10, %v334_v7 }
 0x107   :  { %v440_v44 = vadd.f32 %v439_v12, %v409_v11  ;;  %v369_v16 = vadd.f32 %v368_v13, %v336_v9 }
 0x109   :  { %v370_v18 = vrot.slane %v369_v16, 4  ;;  %v441_v19 = vadd.f32 %v440_v44, %v410_v14 }
 0x10b   :  { %v371_v20 = vadd.f32 %v370_v18, %v369_v16  ;;  %v442_v21 = vrot.slane %v441_v19, 4 }
 0x10d   :  { %v372_v55 = vrot.slane %v371_v20, 2  ;;  %v443_v22 = vadd.f32 %v442_v21, %v441_v19 }
 0x10f   :  { %v373_v23 = vadd.f32 %v372_v55, %v371_v20  ;;  %v444_v24 = vrot.slane %v443_v22, 2 }
 0x111   :  { %v374_v3 = vrot.slane %v373_v23, 1  ;;  %v445_v25 = vadd.f32 %v444_v24, %v443_v22 }
 0x113   :  { %v446_v52 = vrot.slane %v445_v25, 1  ;;  %v375_v27 = vadd.f32 %v374_v3, %v373_v23 }
 0x115   :  { %v447_v29 = vadd.f32 %v446_v52, %v445_v25  ;;  %v376_v30 = vadd.f32 %v375_v27, %v338_v26 }
 0x117   :  { %v448_v31 = vadd.f32 %v447_v29, %v378_v28  ;;  %377 = vst [vmem:[#allocation2] sm:$0x1] %v376_v30 }
 0x118   :  { %721 = dma.vmem_to_hbm [thread:$0]  %s717_s19, 16, %s719_s22, [#allocation3]  }
 0x119   :  { %449 = vst [vmem:[#allocation4] sm:$0x1] %v448_v31 }
 0x11a   :  { %732 = dma.vmem_to_hbm [thread:$0]  %s728_s24, 16, %s730_s26, [#allocation5]  }
 0x136   :  { %v687_v34 = vpop.f32.mrf.mxu1 }
 0x13c   :  { %v701_v36 = vpop.f32.mrf.mxu2 }
 0x13d   :  { %v702_v38 = vadd.f32 %v701_v36, %v687_v34 }
 0x13e   :  { %v689_v15 = vpop.f32.mrf.mxu1 }
 0x13f   :  { %v706_v40 = vadd.f32 %v702_v38, %v548_v35 }
 0x141   :  { %709 = vst.msk [vmem:[#allocation6] sm:$0xff] %vm73_vm1, %v706_v40 }
 0x144   :  { %v703_v43 = vpop.f32.mrf.mxu2 }
 0x145   :  { %v704_v46 = vadd.f32 %v703_v43, %v689_v15 }
 0x147   :  { %v707_v47 = vadd.f32 %v704_v46, %v549_v42 }
 0x149   :  { %710 = vst.msk [vmem:[#allocation6 + $0x8] sm:$0xff] %vm73_vm1, %v707_v47 }
 0x14a   :  { %745 = dma.vmem_to_hbm [thread:$0]  %s738_s5, 256, %s740_s2, [#allocation5], %s1084_s29, %s1084_s29, %s1085_s30  }
 0x14b   :  { %1076 = dma.done.wait [#allocation3], 16  }
 0x14c   :  { %1077 = vsyncadd [#allocation3], 4294967280 }
 0x14d   :  { %1078 = dma.done.wait [#allocation5], 272  }
 0x14e   :  { %1079 = vsyncadd [#allocation5], 4294967024 }
 0x14f   :  { %758 = vsyncpa [#allocation3], 1 }
 0x150   :  { %759 = vsyncpa [#allocation5], 1 }

</bundles_post_ra>
